<compile_context>
chip_gen: v7x
topology: tpu7x:2x2x1
jax: 0.10.0
libtpu: 0.0.40
codegen_flags: <defaults>
</compile_context>

<pallas_src>
import jax
import jax.numpy as jnp
from jax.experimental import pallas as pl
from jax.experimental.pallas import tpu as pltpu

D_MODEL = 768                 # fixed by nn.Linear(768, 1)
SCALE_DIV = 0.00440160646
INV_SCALE = 1.0 / SCALE_DIV
DROPOUT_P = 0.1


def _attn_kernel(x_ref, w_ref, b_ref, u_ref, o_ref):
    """x_ref: (B*S, D) f32, w_ref: (D, 3) f32, b_ref: (1, 3) f32,
    u_ref: (B, S, S) f32 uniform[0,1) dropout randoms, o_ref: (B, S) f32."""
    B, S = o_ref.shape

    # Fused q/k/v projection: one MXU matmul (B*S, D) @ (D, 3) + bias.
    qkv = jnp.dot(x_ref[...], w_ref[...], preferred_element_type=jnp.float32)
    qkv = (qkv + b_ref[...]).reshape(B, S, 3)

    # Fold .div(0.00440160646) into q: O(B*S) multiplies instead of O(S^2).
    q = qkv[..., 0:1] * INV_SCALE            # (B, S, 1)
    k = qkv[..., 1:2]                        # (B, S, 1)
    v = qkv[..., 2:3]                        # (B, S, 1)

    # qk = q @ k^T via a batched MXU contraction (no explicit transpose).
    s = jnp.einsum("bqd,bkd->bqk", q, k,
                   preferred_element_type=jnp.float32)       # (B, S, S)

    # softmax(dim=-1); dropout's 1/(1-p) rescale folded into the row norm,
    # so there is exactly one divide per row and one multiply per element.
    m = jnp.max(s, axis=-1, keepdims=True)
    e = jnp.exp(s - m)
    l = jnp.sum(e, axis=-1, keepdims=True)
    row_scale = (1.0 / (1.0 - DROPOUT_P)) / l                 # (B, S, 1)

    # Inverted dropout: keep with prob 1-p (host-generated uniforms).
    keep = u_ref[...] >= DROPOUT_P                            # (B, S, S) bool
    p = jnp.where(keep, e * row_scale, 0.0)

    # output = dropout_qk @ v, arranged so the result comes out as (B, 1, S):
    # out[b, d, q] = sum_k v[b, k, d] * p[b, q, k]  (d == 1)
    # This keeps S on the lane axis for a lane-dense store (no relayout).
    out = jnp.einsum("bkd,bqk->bdq", v, p,
                     preferred_element_type=jnp.float32)      # (B, 1, S)

    o_ref[...] = out[:, 0, :].astype(o_ref.dtype)             # (B, S) store


@jax.jit
def attention_forward(x, w_qkv, b_qkv, dropout_u):
    """x: (B, S, D) f32, w_qkv: (D, 3) f32, b_qkv: (1, 3) f32,
    dropout_u: (B, S, S) f32 uniforms.  Returns (B, S, 1) f32."""
    B, S, D = x.shape
    assert D == D_MODEL
    x_flat = x.reshape(B * S, D)   # free reshape; one big MXU matmul in-kernel

    out = pl.pallas_call(
        _attn_kernel,
        out_shape=jax.ShapeDtypeStruct((B, S), jnp.float32),
        grid=(1,),                                   # single kernel invocation
        in_specs=[
            pl.BlockSpec((B * S, D), lambda i: (0, 0)),      # x (flattened)
            pl.BlockSpec((D, 3), lambda i: (0, 0)),          # fused weights
            pl.BlockSpec((1, 3), lambda i: (0, 0)),          # fused biases
            pl.BlockSpec((B, S, S), lambda i: (0, 0, 0)),    # dropout uniforms
        ],
        out_specs=pl.BlockSpec((B, S), lambda i: (0, 0)),    # lane-dense output
        compiler_params=pltpu.CompilerParams(
            dimension_semantics=("arbitrary",),
        ),
    )(x_flat, w_qkv, b_qkv, dropout_u)

    # torch's `dropout_qk.matmul(v)` is (B, S, 1); reshape outside the kernel
    # so the in-kernel store stays lane-dense.
    return out.reshape(B, S, 1)


if __name__ == "__main__":
    key = jax.random.PRNGKey(0)
    k_x, k_wq, k_wk, k_wv, k_b, k_drop = jax.random.split(key, 6)

    B, S, D = 2, 8, D_MODEL
    x = jax.random.normal(k_x, (B, S, D), dtype=jnp.float32)

    # Deterministic parameters matching nn.Linear(768, 1) shapes:
    # weight (1, 768), bias (1,) for each of query/key/value.
    bound = 1.0 / (D ** 0.5)
    w_q = jax.random.uniform(k_wq, (1, D), jnp.float32, -bound, bound)
    w_k = jax.random.uniform(k_wk, (1, D), jnp.float32, -bound, bound)
    w_v = jax.random.uniform(k_wv, (1, D), jnp.float32, -bound, bound)
    b_all = jax.random.uniform(k_b, (3,), jnp.float32, -bound, bound)

    # Fuse into (D, 3) / (1, 3) for a single in-kernel matmul.
    w_qkv = jnp.stack([w_q[0], w_k[0], w_v[0]], axis=-1)      # (768, 3)
    b_qkv = b_all.reshape(1, 3)

    # Dropout randomness generated host-side (deterministic). The kernel
    # applies inverted dropout with keep-prob 0.9; the random stream differs
    # from torch's but the semantics match F.dropout(p=0.1, training=True).
    dropout_u = jax.random.uniform(k_drop, (B, S, S), dtype=jnp.float32)

    out = attention_forward(x, w_qkv, b_qkv, dropout_u)
    jax.block_until_ready(out)
    assert out.shape == (B, S, 1)
    print("KERNEL_OK")
</pallas_src>

<mosaic_0001>
module attributes {stable_mosaic.version = 11 : i64} {
  func.func @_attn_kernel(%arg0: i32, %arg1: memref<16x768xf32, #tpu.memory_space<vmem>>, %arg2: memref<768x3xf32, #tpu.memory_space<vmem>>, %arg3: memref<1x3xf32, #tpu.memory_space<vmem>>, %arg4: memref<2x8x8xf32, #tpu.memory_space<vmem>>, %arg5: memref<2x8xf32, #tpu.memory_space<vmem>>) attributes {dimension_semantics = [#tpu.dimension_semantics<arbitrary>], iteration_bounds = array<i64: 1>, scalar_prefetch = 0 : i64, scratch_operands = 0 : i64, tpu.core_type = #tpu.core_type<tc>, window_params = [{pipeline_mode = #tpu.pipeline_mode<synchronous>, transform_indices = @transform_0, window_bounds = array<i64: 16, 768>}, {pipeline_mode = #tpu.pipeline_mode<synchronous>, transform_indices = @transform_1, window_bounds = array<i64: 768, 3>}, {pipeline_mode = #tpu.pipeline_mode<synchronous>, transform_indices = @transform_2, window_bounds = array<i64: 1, 3>}, {pipeline_mode = #tpu.pipeline_mode<synchronous>, transform_indices = @transform_3, window_bounds = array<i64: 2, 8, 8>}, {pipeline_mode = #tpu.pipeline_mode<synchronous>, transform_indices = @transform_4, window_bounds = array<i64: 2, 8>}]} {
    %c0 = arith.constant 0 : index
    %c0_0 = arith.constant 0 : index
    %0 = vector.load %arg1[%c0, %c0_0] : memref<16x768xf32, #tpu.memory_space<vmem>>, vector<16x768xf32>
    %c0_1 = arith.constant 0 : index
    %c0_2 = arith.constant 0 : index
    %1 = vector.load %arg2[%c0_1, %c0_2] : memref<768x3xf32, #tpu.memory_space<vmem>>, vector<768x3xf32>
    %cst = arith.constant dense<0.000000e+00> : vector<16x3xf32>
    %2 = tpu.matmul %0, %1, %cst {dimension_numbers = #tpu.dot_dimension_numbers<[1], [0], [0], [1], [0, 0, 1, 1], [], []>} : vector<16x768xf32>, vector<768x3xf32>, vector<16x3xf32> -> vector<16x3xf32>
    %c0_3 = arith.constant 0 : index
    %c0_4 = arith.constant 0 : index
    %3 = vector.load %arg3[%c0_3, %c0_4] : memref<1x3xf32, #tpu.memory_space<vmem>>, vector<1x3xf32>
    %4 = vector.broadcast %3 : vector<1x3xf32> to vector<16x3xf32>
    %5 = arith.addf %2, %4 : vector<16x3xf32>
    %6 = vector.shape_cast %5 : vector<16x3xf32> to vector<2x8x3xf32>
    %7 = vector.extract_strided_slice %6 {offsets = [0, 0, 0], sizes = [2, 8, 1], strides = [1, 1, 1]} : vector<2x8x3xf32> to vector<2x8x1xf32>
    %cst_5 = arith.constant 227.189774 : f32
    %8 = vector.broadcast %cst_5 : f32 to vector<2x8x1xf32>
    %9 = arith.mulf %7, %8 : vector<2x8x1xf32>
    %10 = vector.extract_strided_slice %6 {offsets = [0, 0, 1], sizes = [2, 8, 1], strides = [1, 1, 1]} : vector<2x8x3xf32> to vector<2x8x1xf32>
    %11 = vector.extract_strided_slice %6 {offsets = [0, 0, 2], sizes = [2, 8, 1], strides = [1, 1, 1]} : vector<2x8x3xf32> to vector<2x8x1xf32>
    "tpu.trace_start"() <{level = 10 : i32, message = "bqd,bkd->bqk"}> : () -> ()
    %cst_6 = arith.constant dense<0.000000e+00> : vector<2x8x8xf32>
    %12 = tpu.matmul %9, %10, %cst_6 {dimension_numbers = #tpu.dot_dimension_numbers<[2], [2], [1], [1], [0, 0, 0, 1, 1, 1], [0], [0]>} : vector<2x8x1xf32>, vector<2x8x1xf32>, vector<2x8x8xf32> -> vector<2x8x8xf32>
    "tpu.trace_stop"() : () -> ()
    %cst_7 = arith.constant dense<0xFF800000> : vector<2x8xf32>
    %13 = vector.multi_reduction <maximumf>, %12, %cst_7 [2] : vector<2x8x8xf32> to vector<2x8xf32>
    %14 = vector.shape_cast %13 : vector<2x8xf32> to vector<2x8x1xf32>
    %15 = vector.broadcast %14 : vector<2x8x1xf32> to vector<2x8x8xf32>
    %16 = arith.subf %12, %15 : vector<2x8x8xf32>
    %17 = math.exp %16 : vector<2x8x8xf32>
    %cst_8 = arith.constant dense<0.000000e+00> : vector<2x8xf32>
    %18 = vector.multi_reduction <add>, %17, %cst_8 [2] : vector<2x8x8xf32> to vector<2x8xf32>
    %19 = vector.shape_cast %18 : vector<2x8xf32> to vector<2x8x1xf32>
    %cst_9 = arith.constant 1.11111116 : f32
    %20 = vector.broadcast %cst_9 : f32 to vector<2x8x1xf32>
    %21 = arith.divf %20, %19 : vector<2x8x1xf32>
    %c0_10 = arith.constant 0 : index
    %c0_11 = arith.constant 0 : index
    %c0_12 = arith.constant 0 : index
    %22 = vector.load %arg4[%c0_10, %c0_11, %c0_12] : memref<2x8x8xf32, #tpu.memory_space<vmem>>, vector<2x8x8xf32>
    %cst_13 = arith.constant 1.000000e-01 : f32
    %23 = vector.broadcast %cst_13 : f32 to vector<2x8x8xf32>
    %24 = arith.cmpf oge, %22, %23 : vector<2x8x8xf32>
    %25 = vector.broadcast %21 : vector<2x8x1xf32> to vector<2x8x8xf32>
    %26 = arith.mulf %17, %25 : vector<2x8x8xf32>
    %cst_14 = arith.constant 0.000000e+00 : f32
    %27 = vector.broadcast %cst_14 : f32 to vector<2x8x8xf32>
    %28 = arith.select %24, %26, %27 : vector<2x8x8xi1>, vector<2x8x8xf32>
    "tpu.trace_start"() <{level = 10 : i32, message = "bkd,bqk->bdq"}> : () -> ()
    %cst_15 = arith.constant dense<0.000000e+00> : vector<2x1x8xf32>
    %29 = tpu.matmul %11, %28, %cst_15 {dimension_numbers = #tpu.dot_dimension_numbers<[1], [2], [2], [1], [0, 0, 0, 2, 1, 1], [0], [0]>} : vector<2x8x1xf32>, vector<2x8x8xf32>, vector<2x1x8xf32> -> vector<2x1x8xf32>
    "tpu.trace_stop"() : () -> ()
    %30 = vector.shape_cast %29 : vector<2x1x8xf32> to vector<2x8xf32>
    %c0_16 = arith.constant 0 : index
    %c0_17 = arith.constant 0 : index
    %31 = vector.load %arg5[%c0_16, %c0_17] : memref<2x8xf32, #tpu.memory_space<vmem>>, vector<2x8xf32>
    tpu.vector_store %arg5[%c0_16, %c0_17], %30 {strides = array<i32>} : memref<2x8xf32, #tpu.memory_space<vmem>>, vector<2x8xf32>,
    return
  }
  func.func @transform_0(%arg0: i32) -> (i32, i32) {
    %c0_i32 = arith.constant 0 : i32
    %c0_i32_0 = arith.constant 0 : i32
    %c0_i32_1 = arith.constant 0 : i32
    return %c0_i32, %c0_i32_0 : i32, i32
  }
  func.func @transform_1(%arg0: i32) -> (i32, i32) {
    %c0_i32 = arith.constant 0 : i32
    %c0_i32_0 = arith.constant 0 : i32
    %c0_i32_1 = arith.constant 0 : i32
    return %c0_i32, %c0_i32_0 : i32, i32
  }
  func.func @transform_2(%arg0: i32) -> (i32, i32) {
    %c0_i32 = arith.constant 0 : i32
    %c0_i32_0 = arith.constant 0 : i32
    %c0_i32_1 = arith.constant 0 : i32
    return %c0_i32, %c0_i32_0 : i32, i32
  }
  func.func @transform_3(%arg0: i32) -> (i32, i32, i32) {
    %c0_i32 = arith.constant 0 : i32
    %c0_i32_0 = arith.constant 0 : i32
    %c0_i32_1 = arith.constant 0 : i32
    %c0_i32_2 = arith.constant 0 : i32
    return %c0_i32, %c0_i32_0, %c0_i32_1 : i32, i32, i32
  }
  func.func @transform_4(%arg0: i32) -> (i32, i32) {
    %c0_i32 = arith.constant 0 : i32
    %c0_i32_0 = arith.constant 0 : i32
    %c0_i32_1 = arith.constant 0 : i32
    return %c0_i32, %c0_i32_0 : i32, i32
  }
}

</mosaic_0001>

<bundles_post_ra>
// kernel: attention_forward.1
= control target key start
LH: loop header
LB: loop body
LE: loop exit
PB: predicated region body
PF: predicated region fallthrough
CT: control target
= control target key end

     0   :  { %s1471_s0 = inlined_call_operand.vmem [shape: f32[16,768], index: 0, kind: input, shape index: {}]   ;;  %s1472_s1 = inlined_call_operand.vmem [shape: f32[768,3], index: 1, kind: input, shape index: {}]   ;;  %s1473_s2 = inlined_call_operand.vmem [shape: f32[1,3], index: 2, kind: input, shape index: {}]   ;;  %s1474_s3 = inlined_call_operand.vmem [shape: f32[2,8,8], index: 3, kind: input, shape index: {}]   ;;  %s1475_s4 = inlined_call_operand.hbm [shape: f32[2,8], index: 4, kind: output, shape index: {}]  }
   0x1   :  { %v46_v0 = vld [vmem:[%s1472_s1 + $0x80] sm:$0xff]  ;;  %v47_v1 = vld [vmem:[%s1472_s1 + $0x88] sm:$0xff]  ;;  %v48_v11 = vld [vmem:[%s1472_s1 + $0x90] sm:$0xff] }
   0x2   :  { %v30_v2 = vld [vmem:[%s1472_s1] sm:$0xff]  ;;  %v943_v3 = vpack.c.bf16 %v47_v1, %v46_v0  ;;  %v31_v4 = vld [vmem:[%s1472_s1 + $0x8] sm:$0xff]  ;;  %v49_v13 = vld [vmem:[%s1472_s1 + $0x98] sm:$0xff] }
   0x3   :  { %v78_v5 = vld [vmem:[%s1472_s1 + $0x180] sm:$0xff]  ;;  %v79_v6 = vld [vmem:[%s1472_s1 + $0x188] sm:$0xff]  ;;  %v945_v7 = vpack.c.bf16 %v31_v4, %v30_v2  ;;  %v32_v14 = vld [vmem:[%s1472_s1 + $0x10] sm:$0xff]  ;;  %v947_v16 = vpack.c.bf16 %v49_v13, %v48_v11 }
   0x4   :  { %v975_v8 = vpack.c.bf16 %v79_v6, %v78_v5  ;;  %v62_v9 = vld [vmem:[%s1472_s1 + $0x100] sm:$0xff]  ;;  %v63_v10 = vld [vmem:[%s1472_s1 + $0x108] sm:$0xff]  ;;  %944 = vmatprep.subr.bf16.mxu0 %v943_v3  ;;  %v33_v15 = vld [vmem:[%s1472_s1 + $0x18] sm:$0xff] }
   0x5   :  { %v977_v12 = vpack.c.bf16 %v63_v10, %v62_v9  ;;  %946 = vmatpush3.bf16.msra.mxu0 %v945_v7  ;;  %v949_v17 = vpack.c.bf16 %v33_v15, %v32_v14  ;;  %v80_v18 = vld [vmem:[%s1472_s1 + $0x190] sm:$0xff]  ;;  %v81_v19 = vld [vmem:[%s1472_s1 + $0x198] sm:$0xff]  ;;  %v50_v23 = vld [vmem:[%s1472_s1 + $0xa0] sm:$0xff] }
   0x6   :  { %976 = vmatprep.subr.bf16.mxu1 %v975_v8  ;;  %v64_v20 = vld [vmem:[%s1472_s1 + $0x110] sm:$0xff]  ;;  %v979_v21 = vpack.c.bf16 %v81_v19, %v80_v18  ;;  %v65_v22 = vld [vmem:[%s1472_s1 + $0x118] sm:$0xff]  ;;  %v51_v24 = vld [vmem:[%s1472_s1 + $0xa8] sm:$0xff]  ;;  %948 = vmatprep.subr.bf16.mxu0 %v947_v16 }
   0x7   :  { %978 = vmatpush3.bf16.msra.mxu1 %v977_v12  ;;  %v981_v25 = vpack.c.bf16 %v65_v22, %v64_v20  ;;  %v951_v26 = vpack.c.bf16 %v51_v24, %v50_v23  ;;  %v34_v27 = vld [vmem:[%s1472_s1 + $0x20] sm:$0xff]  ;;  %v35_v28 = vld [vmem:[%s1472_s1 + $0x28] sm:$0xff]  ;;  %v52_v35 = vld [vmem:[%s1472_s1 + $0xb0] sm:$0xff] }
   0x8   :  { %v82_v29 = vld [vmem:[%s1472_s1 + $0x1a0] sm:$0xff]  ;;  %980 = vmatprep.subr.bf16.mxu1 %v979_v21  ;;  %v83_v30 = vld [vmem:[%s1472_s1 + $0x1a8] sm:$0xff]  ;;  %v953_v33 = vpack.c.bf16 %v35_v28, %v34_v27  ;;  %v53_v36 = vld [vmem:[%s1472_s1 + $0xb8] sm:$0xff] }
   0x9   :  { %v66_v31 = vld [vmem:[%s1472_s1 + $0x120] sm:$0xff]  ;;  %v67_v32 = vld [vmem:[%s1472_s1 + $0x128] sm:$0xff]  ;;  %950 = vmatpush3.bf16.msra.mxu0 %v949_v17  ;;  %v983_v34 = vpack.c.bf16 %v83_v30, %v82_v29  ;;  %v36_v37 = vld [vmem:[%s1472_s1 + $0x30] sm:$0xff]  ;;  %v955_v39 = vpack.c.bf16 %v53_v36, %v52_v35 }
   0xa   :  { %952 = vmatprep.subr.bf16.mxu0 %v951_v26  ;;  %v985_v38 = vpack.c.bf16 %v67_v32, %v66_v31  ;;  %v37_v40 = vld [vmem:[%s1472_s1 + $0x38] sm:$0xff]  ;;  %v84_v41 = vld [vmem:[%s1472_s1 + $0x1b0] sm:$0xff]  ;;  %v54_v46 = vld [vmem:[%s1472_s1 + $0xc0] sm:$0xff] }
   0xb   :  { %982 = vmatpush3.bf16.msra.mxu1 %v981_v25  ;;  %v85_v42 = vld [vmem:[%s1472_s1 + $0x1b8] sm:$0xff]  ;;  %v68_v44 = vld [vmem:[%s1472_s1 + $0x130] sm:$0xff]  ;;  %v55_v47 = vld [vmem:[%s1472_s1 + $0xc8] sm:$0xff]  ;;  %v957_v48 = vpack.c.bf16 %v37_v40, %v36_v37 }
   0xc   :  { %984 = vmatprep.subr.bf16.mxu1 %v983_v34  ;;  %v987_v43 = vpack.c.bf16 %v85_v42, %v84_v41  ;;  %v69_v45 = vld [vmem:[%s1472_s1 + $0x138] sm:$0xff]  ;;  %v86_v49 = vld [vmem:[%s1472_s1 + $0x1c0] sm:$0xff]  ;;  %v87_v50 = vld [vmem:[%s1472_s1 + $0x1c8] sm:$0xff]  ;;  %v959_v52 = vpack.c.bf16 %v55_v47, %v54_v46 }
   0xd   :  { %954 = vmatpush3.bf16.msra.mxu0 %v953_v33  ;;  %v989_v51 = vpack.c.bf16 %v69_v45, %v68_v44  ;;  %v38_v53 = vld [vmem:[%s1472_s1 + $0x40] sm:$0xff]  ;;  %v39_v54 = vld [vmem:[%s1472_s1 + $0x48] sm:$0xff]  ;;  %v991_v56 = vpack.c.bf16 %v87_v50, %v86_v49  ;;  %v56_v58 = vld [vmem:[%s1472_s1 + $0xd0] sm:$0xff] }
   0xe   :  { %956 = vmatprep.subr.bf16.mxu0 %v955_v39  ;;  %v70_v55 = vld [vmem:[%s1472_s1 + $0x140] sm:$0xff]  ;;  %v71_v57 = vld [vmem:[%s1472_s1 + $0x148] sm:$0xff]  ;;  %v57_v59 = vld [vmem:[%s1472_s1 + $0xd8] sm:$0xff]  ;;  %v961_v62 = vpack.c.bf16 %v39_v54, %v38_v53 }
   0xf   :  { %986 = vmatpush3.bf16.msra.mxu1 %v985_v38  ;;  %v88_v60 = vld [vmem:[%s1472_s1 + $0x1d0] sm:$0xff]  ;;  %v89_v61 = vld [vmem:[%s1472_s1 + $0x1d8] sm:$0xff]  ;;  %v993_v63 = vpack.c.bf16 %v71_v57, %v70_v55  ;;  %v963_v0 = vpack.c.bf16 %v57_v59, %v56_v58  ;;  %v58_v6 = vld [vmem:[%s1472_s1 + $0xe0] sm:$0xff] }
  0x10   :  { %988 = vmatprep.subr.bf16.mxu1 %v987_v43  ;;  %v40_v1 = vld [vmem:[%s1472_s1 + $0x50] sm:$0xff]  ;;  %v41_v2 = vld [vmem:[%s1472_s1 + $0x58] sm:$0xff]  ;;  %v995_v4 = vpack.c.bf16 %v89_v61, %v88_v60  ;;  %v59_v7 = vld [vmem:[%s1472_s1 + $0xe8] sm:$0xff] }
  0x11   :  { %958 = vmatpush3.bf16.msra.mxu0 %v957_v48  ;;  %v72_v3 = vld [vmem:[%s1472_s1 + $0x150] sm:$0xff]  ;;  %v73_v5 = vld [vmem:[%s1472_s1 + $0x158] sm:$0xff]  ;;  %v90_v8 = vld [vmem:[%s1472_s1 + $0x1e0] sm:$0xff]  ;;  %v965_v10 = vpack.c.bf16 %v41_v2, %v40_v1  ;;  %v967_v14 = vpack.c.bf16 %v59_v7, %v58_v6 }
  0x12   :  { %960 = vmatprep.subr.bf16.mxu0 %v959_v52  ;;  %v91_v9 = vld [vmem:[%s1472_s1 + $0x1e8] sm:$0xff]  ;;  %v42_v11 = vld [vmem:[%s1472_s1 + $0x60] sm:$0xff]  ;;  %v997_v13 = vpack.c.bf16 %v73_v5, %v72_v3  ;;  %v60_v19 = vld [vmem:[%s1472_s1 + $0xf0] sm:$0xff] }
  0x13   :  { %990 = vmatpush3.bf16.msra.mxu1 %v989_v51  ;;  %v19_v12 = vld [vmem:[%s1471_s0 + $0x8] sm:$0xff]  ;;  %v74_v16 = vld [vmem:[%s1472_s1 + $0x160] sm:$0xff]  ;;  %v999_v18 = vpack.c.bf16 %v91_v9, %v90_v8  ;;  %v61_v20 = vld [vmem:[%s1472_s1 + $0xf8] sm:$0xff] }
  0x14   :  { %992 = vmatprep.subr.bf16.mxu1 %v991_v56  ;;  %v43_v15 = vld [vmem:[%s1472_s1 + $0x68] sm:$0xff]  ;;  %197 = vmatprep.mubr.f32.mxu0 %v19_v12  ;;  %v21_v21 = vld [vmem:[%s1471_s0 + $0x18] sm:$0xff]  ;;  %v92_v22 = vld [vmem:[%s1472_s1 + $0x1f0] sm:$0xff]  ;;  %v971_v26 = vpack.c.bf16 %v61_v20, %v60_v19 }
  0x15   :  { %962 = vmatpush3.bf16.msra.mxu0 %v961_v62  ;;  %v75_v17 = vld [vmem:[%s1472_s1 + $0x168] sm:$0xff]  ;;  %v93_v23 = vld [vmem:[%s1472_s1 + $0x1f8] sm:$0xff]  ;;  %272 = vmatprep.mubr.f32.mxu1 %v21_v21  ;;  %v969_v24 = vpack.c.bf16 %v43_v15, %v42_v11  ;;  %v44_v27 = vld [vmem:[%s1472_s1 + $0x70] sm:$0xff] }
  0x16   :  { %964 = vmatprep.subr.bf16.mxu0 %v963_v0  ;;  %v1001_v25 = vpack.c.bf16 %v75_v17, %v74_v16  ;;  %v45_v28 = vld [vmem:[%s1472_s1 + $0x78] sm:$0xff]  ;;  %v76_v29 = vld [vmem:[%s1472_s1 + $0x170] sm:$0xff]  ;;  %v1003_v30 = vpack.c.bf16 %v93_v23, %v92_v22  ;;  %v110_v32 = vld [vmem:[%s1472_s1 + $0x280] sm:$0xff] }
  0x17   :  { %994 = vmatpush3.bf16.msra.mxu1 %v993_v63  ;;  %v77_v31 = vld [vmem:[%s1472_s1 + $0x178] sm:$0xff]  ;;  %v111_v33 = vld [vmem:[%s1472_s1 + $0x288] sm:$0xff]  ;;  %v973_v34 = vpack.c.bf16 %v45_v28, %v44_v27  ;;  %v94_v37 = vld [vmem:[%s1472_s1 + $0x200] sm:$0xff] }
  0x18   :  { %996 = vmatprep.subr.bf16.mxu1 %v995_v4  ;;  %v1005_v35 = vpack.c.bf16 %v77_v31, %v76_v29  ;;  %v1007_v36 = vpack.c.bf16 %v111_v33, %v110_v32  ;;  %v95_v38 = vld [vmem:[%s1472_s1 + $0x208] sm:$0xff]  ;;  %v112_v39 = vld [vmem:[%s1472_s1 + $0x290] sm:$0xff]  ;;  %v113_v40 = vld [vmem:[%s1472_s1 + $0x298] sm:$0xff] }
  0x19   :  { %966 = vmatpush3.bf16.msra.mxu0 %v965_v10  ;;  %v18_v41 = vld [vmem:[%s1471_s0] sm:$0xff]  ;;  %v1009_v42 = vpack.c.bf16 %v95_v38, %v94_v37  ;;  %v20_v43 = vld [vmem:[%s1471_s0 + $0x10] sm:$0xff]  ;;  %v1011_v44 = vpack.c.bf16 %v113_v40, %v112_v39  ;;  %v97_v46 = vld [vmem:[%s1472_s1 + $0x218] sm:$0xff] }
  0x1a   :  { %968 = vmatprep.subr.bf16.mxu0 %v967_v14  ;;  %v96_v45 = vld [vmem:[%s1472_s1 + $0x210] sm:$0xff]  ;;  %v114_v47 = vld [vmem:[%s1472_s1 + $0x2a0] sm:$0xff]  ;;  %v115_v48 = vld [vmem:[%s1472_s1 + $0x2a8] sm:$0xff] }
  0x1b   :  { %998 = vmatpush3.bf16.msra.mxu1 %v997_v13  ;;  %v25_v49 = vld [vmem:[%s1471_s0 + $0x38] sm:$0xff]  ;;  %v27_v50 = vld [vmem:[%s1471_s0 + $0x48] sm:$0xff]  ;;  %v1013_v51 = vpack.c.bf16 %v97_v46, %v96_v45  ;;  %v24_v52 = vld [vmem:[%s1471_s0 + $0x30] sm:$0xff] }
  0x1c   :  { %1000 = vmatprep.subr.bf16.mxu1 %v999_v18 }
  0x1d   :  { %970 = vmatpush3.bf16.msra.mxu0 %v969_v24 }
  0x1e   :  { %972 = vmatprep.subr.bf16.mxu0 %v971_v26 }
  0x1f   :  { %1002 = vmatpush3.bf16.msra.mxu1 %v1001_v25 }
  0x20   :  { %1004 = vmatprep.subr.bf16.mxu1 %v1003_v30 }
  0x21   :  { %974 = vmatpush3.bf16.msra.mxu0 %v973_v34 }
  0x22   :  { %1008 = vmatprep.subr.bf16.mxu0 %v1007_v36 }
  0x23   :  { %1006 = vmatpush3.bf16.msra.mxu1 %v1005_v35 }
  0x24   :  { %198 = vmatmul.mubr.f32.vlgmr.msra.gmra.mrb[0].mxu0 %v18_v41 }
  0x25   :  { %1010 = vmatpush3.bf16.msra.mxu0 %v1009_v42 }
  0x26   :  { %273 = vmatmul.mubr.f32.vlgmr.msra.gmra.mrb[0].mxu1 %v20_v43 }
  0x27   :  { %9 = vsyncpa [#allocation3], 0  ;;  %1012 = vmatprep.subr.bf16.mxu0 %v1011_v44  ;;  %v1015_v53 = vpack.c.bf16 %v115_v48, %v114_v47  ;;  %v98_v54 = vld [vmem:[%s1472_s1 + $0x220] sm:$0xff]  ;;  %v99_v55 = vld [vmem:[%s1472_s1 + $0x228] sm:$0xff]  ;;  %202 = vmatprep.mubr.f32.mxu0 %v25_v49  ;;  %v1076_v28 = vmov 0.0   ;;  %vm1077_vm0 = vmmov 0  }
  0x28   :  { %v26_v56 = vld [vmem:[%s1471_s0 + $0x40] sm:$0xff]  ;;  %v116_v57 = vld [vmem:[%s1472_s1 + $0x2b0] sm:$0xff]  ;;  %v117_v58 = vld [vmem:[%s1472_s1 + $0x2b8] sm:$0xff]  ;;  %277 = vmatprep.mubr.f32.mxu1 %v27_v50  ;;  %203 = vmatmul.mubr.f32.gmra.mrb[2].mxu0 %v24_v52  ;;  %v1017_v60 = vpack.c.bf16 %v99_v55, %v98_v54  ;;  %vm363_vm1 = vcmask 7168   ;;  %vm517_vm2 = vcmask 64512   ;;  %vm773_vm5 = vcmask 1041409  }
  0x29   :  { %v23_v59 = vld [vmem:[%s1471_s0 + $0x28] sm:$0xff]  ;;  %1014 = vmatpush3.bf16.msra.mxu0 %v1013_v51  ;;  %v1019_v61 = vpack.c.bf16 %v117_v58, %v116_v57  ;;  %v100_v62 = vld [vmem:[%s1472_s1 + $0x230] sm:$0xff]  ;;  %v101_v63 = vld [vmem:[%s1472_s1 + $0x238] sm:$0xff]  ;;  %923 = vmatprep.subr.mxu1 %v1076_v28  ;;  %vm776_vm6 = vcmask 58368  }
  0x2a   :  { %278 = vmatmul.mubr.f32.gmra.mrb[2].mxu1 %v26_v56  ;;  %1016 = vmatprep.subr.bf16.mxu0 %v1015_v53  ;;  %v118_v0 = vld [vmem:[%s1472_s1 + $0x2c0] sm:$0xff]  ;;  %v119_v1 = vld [vmem:[%s1472_s1 + $0x2c8] sm:$0xff]  ;;  %v1021_v2 = vpack.c.bf16 %v101_v63, %v100_v62  ;;  %v120_v6 = vld [vmem:[%s1472_s1 + $0x2d0] sm:$0xff] }
  0x2b   :  { %347 = vmatprep.mubr.f32.mxu0 %v23_v59  ;;  %v1023_v3 = vpack.c.bf16 %v119_v1, %v118_v0  ;;  %v102_v4 = vld [vmem:[%s1472_s1 + $0x240] sm:$0xff]  ;;  %v103_v5 = vld [vmem:[%s1472_s1 + $0x248] sm:$0xff]  ;;  %v121_v7 = vld [vmem:[%s1472_s1 + $0x2d8] sm:$0xff]  ;;  %925 = vmatprep.mubr.msk.f32.mxu1 %vm1077_vm0, %v1076_v28 }
  0x2c   :  { %v1025_v8 = vpack.c.bf16 %v103_v5, %v102_v4  ;;  %v1027_v9 = vpack.c.bf16 %v121_v7, %v120_v6  ;;  %v104_v10 = vld [vmem:[%s1472_s1 + $0x250] sm:$0xff]  ;;  %v105_v11 = vld [vmem:[%s1472_s1 + $0x258] sm:$0xff]  ;;  %v122_v12 = vld [vmem:[%s1472_s1 + $0x2e0] sm:$0xff] }
  0x2d   :  { %1018 = vmatpush3.bf16.msra.mxu0 %v1017_v60  ;;  %v123_v13 = vld [vmem:[%s1472_s1 + $0x2e8] sm:$0xff]  ;;  %v1029_v14 = vpack.c.bf16 %v105_v11, %v104_v10  ;;  %v106_v16 = vld [vmem:[%s1472_s1 + $0x260] sm:$0xff]  ;;  %v124_v18 = vld [vmem:[%s1472_s1 + $0x2f0] sm:$0xff] }
  0x2e   :  { %1020 = vmatprep.subr.bf16.mxu0 %v1019_v61  ;;  %v1031_v15 = vpack.c.bf16 %v123_v13, %v122_v12  ;;  %v107_v17 = vld [vmem:[%s1472_s1 + $0x268] sm:$0xff]  ;;  %v125_v19 = vld [vmem:[%s1472_s1 + $0x2f8] sm:$0xff]  ;;  %v108_v22 = vld [vmem:[%s1472_s1 + $0x270] sm:$0xff] }
  0x2f   :  { %v1033_v20 = vpack.c.bf16 %v107_v17, %v106_v16  ;;  %v1035_v21 = vpack.c.bf16 %v125_v19, %v124_v18  ;;  %v109_v23 = vld [vmem:[%s1472_s1 + $0x278] sm:$0xff]  ;;  %v22_v25 = vld [vmem:[%s1471_s0 + $0x20] sm:$0xff]  ;;  %v28_v27 = vld [vmem:[%s1471_s0 + $0x50] sm:$0xff] }
  0x30   :  { %v1037_v24 = vpack.c.bf16 %v109_v23, %v108_v22  ;;  %v29_v26 = vld [vmem:[%s1471_s0 + $0x58] sm:$0xff]  ;;  %v792_v30 = vld [vmem:[%s1473_s2] ss:$0 sm:$0xff]  ;;  %s1078_s0 = smov 127   ;;  %s1079_s2 = smov 126   ;;  %v541_v18 = vld [vmem:[%s1474_s3 + $0x8] sm:$0xff] }
  0x31   :  { %1022 = vmatpush3.bf16.msra.mxu0 %v1021_v2  ;;  %vm543_vm4 = vcmp.ge.f32.partialorder %v541_v18, 0.1 }
  0x32   :  { %1024 = vmatprep.subr.bf16.mxu0 %v1023_v3 }
  0x35   :  { %1026 = vmatpush3.bf16.msra.mxu0 %v1025_v8 }
  0x36   :  { %1028 = vmatprep.subr.bf16.mxu0 %v1027_v9 }
  0x39   :  { %1030 = vmatpush3.bf16.msra.mxu0 %v1029_v14  ;;  %v540_v14 = vld [vmem:[%s1474_s3] sm:$0xff]  ;;  %s1080_s3 = smov [#allocation2]  }
  0x3a   :  { %1032 = vmatprep.subr.bf16.mxu0 %v1031_v15  ;;  %vm542_vm3 = vcmp.ge.f32.partialorder %v540_v14, 0.1  ;;  %s784_s28 = sshll.u32 %s1080_s3, 4  ;;  %s785_s28 = int_to_ptr.vmem [resolvable:$true] %s784_s28 }
  0x3b   :  { %s1052_s29 = scalar_lea.vmem %s785_s28, 32  ;;  %p1057_p1 = scmp.lt.s32.totalorder %s785_s28, %s785_s28 }
  0x3c   :  { %p1053_p0 = scmp.ne.s32.totalorder %s785_s28, %s1052_s29  ;;  %p1058_p2 = scmp.lt.s32.totalorder %s1052_s29, %s1052_s29 }
  0x3d   :  { %1034 = vmatpush3.bf16.msra.mxu0 %v1033_v20 }
  0x3e   :  { %1036 = vmatprep.subr.bf16.mxu0 %v1035_v21  ;;  %p1059_p3 = por %p1058_p2, %p1057_p1 }
  0x40   :  { %p1060_p4 = pnand %p1059_p3, %p1053_p0 }
  0x41   :  { %1038 = vmatpush3.bf16.msra.mxu0 %v1037_v24 }
  0x44   :  { %348 = vmatmul.mubr.f32.vlgmr.msra.gmra.mrb[4].mxu0 %v22_v25 }
  0x45   :  { %352 = vmatprep.mubr.f32.mxu0 %v29_v26 }
  0x48   :  { %353 = vmatmul.mubr.f32.gmra.mrb[6].mxu0 %v28_v27 }
  0xf7   :  { %v833_v29 = vpop.f32.mrb[0].mxu0 }
  0xf8   :  { %v834_v31 = vpop.f32.mrb[1].mxu0 }
  0xf9   :  { %v871_v32 = vpop.f32.mrb[0].mxu1  ;;  %v835_v33 = vadd.f32 %v834_v31, %v833_v29 }
  0xfa   :  { %v872_v34 = vpop.f32.mrb[1].mxu1 }
  0xfb   :  { %v873_v35 = vadd.f32 %v872_v34, %v871_v32  ;;  %v200_v36 = vadd.f32 %v835_v33, %v792_v30  ;;  %v836_v37 = vpop.f32.mrb[2].mxu0 }
  0xfc   :  { %v837_v38 = vpop.f32.mrb[3].mxu0 }
  0xfd   :  { %v874_v39 = vpop.f32.mrb[2].mxu1  ;;  %v275_v40 = vadd.f32 %v873_v35, %v200_v36  ;;  %v838_v41 = vadd.f32 %v837_v38, %v836_v37 }
  0xfe   :  { %v875_v42 = vpop.f32.mrb[3].mxu1 }
  0xff   :  { %v876_v43 = vadd.f32 %v875_v42, %v874_v39  ;;  %v205_v44 = vadd.f32 %v838_v41, %v792_v30 }
 0x101   :  { %v280_v45 = vadd.f32 %v876_v43, %v205_v44 }
 0x117   :  { %v909_v46 = vpop.f32.mrb[4].mxu0 }
 0x118   :  { %v910_v47 = vpop.f32.mrb[5].mxu0 }
 0x119   :  { %v911_v48 = vadd.f32 %v910_v47, %v909_v46 }
 0x11b   :  { %v350_v49 = vadd.f32 %v911_v48, %v275_v40  ;;  %v912_v50 = vpop.f32.mrb[6].mxu0 }
 0x11c   :  { %v913_v51 = vpop.f32.mrb[7].mxu0 }
 0x11d   :  { %v914_v52 = vadd.f32 %v913_v51, %v912_v50  ;;  %361 = vrot.lane.b32.xlu0 %v350_v49, %s1078_s0  ;;  %v358_v55 = vmul.f32 227.18977, %v350_v49 }
 0x11f   :  { %v355_v53 = vadd.f32 %v914_v52, %v280_v45 }
 0x121   :  { %440 = vrot.lane.b32.xlu0 %v355_v53, %s1078_s0  ;;  %v359_v57 = vmul.f32 227.18977, %v355_v53 }
 0x125   :  { %548 = vrot.lane.b32.xlu0 %v350_v49, %s1079_s2 }
 0x129   :  { %659 = vrot.lane.b32.xlu0 %v355_v53, %s1079_s2 }
 0x18f   :  { %v362_v54 = vpop.permute.xlu0 %361 }
 0x190   :  { %924 = vmatpush3.xpose.msk.msra.mxu1 %vm363_vm1, %v362_v54 }
 0x191   :  { %928 = vmatprep.subr.mxu1 %v1076_v28 }
 0x193   :  { %v441_v56 = vpop.permute.xlu0 %440  ;;  %926 = vmatmul.mubr.msk.f32.vlgmr.msra.gmra.mrb[4].mxu1 %vm363_vm1, %v358_v55 }
 0x194   :  { %929 = vmatpush3.xpose.msk.msra.mxu1 %vm363_vm1, %v441_v56  ;;  %930 = vmatprep.mubr.msk.f32.mxu1 %vm1077_vm0, %v1076_v28 }
 0x195   :  { %933 = vmatprep.subr.mxu1 %v1076_v28 }
 0x197   :  { %v549_v58 = vpop.permute.xlu0 %548  ;;  %931 = vmatmul.mubr.msk.f32.vlgmr.msra.gmra.mrb[6].mxu1 %vm363_vm1, %v359_v57 }
 0x198   :  { %551 = vxpose.xlu0.b32.start.end [1/1] (short) (narrow) %v549_v58, 8  ;;  %935 = vmatprep.mubr.msk.f32.mxu1 %vm1077_vm0, %v1076_v28 }
 0x19b   :  { %v660_v11 = vpop.permute.xlu0 %659 }
 0x218   :  { %v567_v22 = vpop.trf.xlu0 }
 0x266   :  { %v435_v59 = vpop.f32.mrb[4].mxu1 }
 0x267   :  { %v927_v60 = vpop.f32.mrb[5].mxu1  ;;  %v518_v61 = vsel %vm517_vm2, %v435_v59, -inf }
 0x268   :  { %519 = vmax.xlane.f32.xlu1 %v518_v61 }
 0x26a   :  { %v513_v62 = vpop.f32.mrb[6].mxu1 }
 0x26b   :  { %v932_v63 = vpop.f32.mrb[7].mxu1  ;;  %v521_v0 = vsel %vm517_vm2, %v513_v62, -inf }
 0x26c   :  { %522 = vmax.xlane.f32.xlu1 %v521_v0 }
 0x2f5   :  { %v520_v1 = vpop.xlane.xlu1 %519 }
 0x2f6   :  { %v524_v2 = vsub.f32 %v435_v59, %v520_v1 }
 0x2f8   :  { %v526_v3 = vmul.f32 1.442695, %v524_v2 }
 0x2f9   :  { %v523_v4 = vpop.xlane.xlu1 %522 }
 0x2fa   :  { %1044 = vpow2.f32 %v526_v3  ;;  %v525_v5 = vsub.f32 %v513_v62, %v523_v4 }
 0x2fc   :  { %v528_v6 = vmul.f32 1.442695, %v525_v5 }
 0x2fe   :  { %1046 = vpow2.f32 %v528_v6 }
 0x304   :  { %v1045_v7 = vpop.eup %1044 }
 0x305   :  { %v530_v8 = vsel %vm517_vm2, %v1045_v7, 0.0 }
 0x306   :  { %531 = vadd.xlane.f32.xlu1 %v530_v8 }
 0x308   :  { %v1047_v9 = vpop.eup %1046 }
 0x309   :  { %v533_v10 = vsel %vm517_vm2, %v1047_v9, 0.0 }
 0x30a   :  { %534 = vadd.xlane.f32.xlu1 %v533_v10 }
 0x33d   :  { %662 = vxpose.xlu1.b32.start.end [1/1] (short) (narrow) %v660_v11, 8 }
 0x393   :  { %v532_v12 = vpop.xlane.xlu1 %531 }
 0x394   :  { %1048 = vrcp.f32 %v532_v12 }
 0x397   :  { %v535_v13 = vpop.xlane.xlu1 %534 }
 0x398   :  { %1050 = vrcp.f32 %v535_v13 }
 0x39e   :  { %v1049_v15 = vpop.eup %1048 }
 0x39f   :  { %v537_v16 = vmul.f32 1.1111112, %v1049_v15 }
 0x3a1   :  { %v544_v17 = vmul.f32 %v1045_v7, %v537_v16 }
 0x3a2   :  { %v1051_v19 = vpop.eup %1050 }
 0x3a3   :  { %v539_v20 = vmul.f32 1.1111112, %v1051_v19  ;;  %v546_v21 = vsel %vm542_vm3, %v544_v17, 0.0 }
 0x3a4   :  { %934 = vmatpush3.xpose.msk.msra.mxu1 %vm517_vm2, %v546_v21 }
 0x3a5   :  { %v545_v23 = vmul.f32 %v1047_v9, %v539_v20  ;;  %938 = vmatprep.subr.mxu1 %v1076_v28 }
 0x3a7   :  { %936 = vmatmul.mubr.msk.f32.vlgmr.msra.gmra.mrb[8].mxu1 %vm517_vm2, %v567_v22  ;;  %v547_v24 = vsel %vm543_vm4, %v545_v23, 0.0 }
 0x3a8   :  { %939 = vmatpush3.xpose.msk.msra.mxu1 %vm517_vm2, %v547_v24  ;;  %940 = vmatprep.mubr.msk.f32.mxu1 %vm1077_vm0, %v1076_v28 }
 0x3bd   :  { %v678_v25 = vpop.trf.xlu1 }
 0x3be   :  { %941 = vmatmul.mubr.msk.f32.vlgmr.msra.gmra.mrb[10].mxu1 %vm517_vm2, %v678_v25 }
 0x47a   :  { %v655_v26 = vpop.f32.mrb[8].mxu1 }
 0x47b   :  { %v937_v27 = vpop.f32.mrb[9].mxu1 }
 0x491   :  { %v766_v29 = vpop.f32.mrb[10].mxu1 }
 0x492   :  { %v772_v30 = vrot.slane %v766_v29, 7  ;;  %v942_v31 = vpop.f32.mrb[11].mxu1 }
 0x494   :  { %v774_v32 = vsel %vm773_vm5, %v772_v30, %v655_v26 }
 0x495   :  { %777 = vst.msk [vmem:[#allocation2] sm:$0x3] %vm776_vm6, %v774_v32 }
 0x496   :  { %1063 = shalt.err (!%p1060_p4)
}
 0x497   :  { %s1064_s6 = scalar_lea.hbm %s1475_s4, 32 }
 0x498   :  { %p1065_p5 = scmp.ne.s32.totalorder %s1475_s4, %s1064_s6  ;;  %p1068_p6 = scmp.lt.u32.totalorder %s1064_s6, %s1475_s4 }
 0x49a   :  { %p1070_p7 = pnand %p1068_p6, %p1065_p5 }
 0x49c   :  { %1073 = shalt.err (!%p1070_p7)
}
 0x49d   :  { %787 = dma.vmem_to_hbm [thread:$0]  %s785_s28, 32, %s1475_s4, [#allocation3]  }
 0x49e   :  { %1074 = dma.done.wait [#allocation3], 32  }
 0x49f   :  { %1075 = vsyncadd [#allocation3], 4294967264 }
 0x4a0   :  { %791 = vsyncpa [#allocation3], 1 }

</bundles_post_ra>
